<compile_context>
chip_gen: v7x
topology: tpu7x:2x2x1
jax: 0.10.0
libtpu: 0.0.40
codegen_flags: <defaults>
</compile_context>

<pallas_src>
import math
import jax
import jax.numpy as jnp
from jax.experimental import pallas as pl
from jax.experimental.pallas import tpu as pltpu


# ----------------------------------------------------------------------------- VMEM limit
_VMEM_LIMIT_CACHE = None


def _vmem_limit():
    """Generation-aware scoped-VMEM limit: 96 MiB on 128-MiB v5e/v6e, 48 MiB on 64-MiB v7x."""
    global _VMEM_LIMIT_CACHE
    if _VMEM_LIMIT_CACHE is None:
        cap = 64 * 1024 * 1024
        try:
            cap = int(getattr(pltpu.get_tpu_info(), "vmem_capacity_bytes", cap))
        except Exception:
            pass
        _VMEM_LIMIT_CACHE = (96 * 1024 * 1024) if cap >= 100 * 1024 * 1024 else (48 * 1024 * 1024)
    return _VMEM_LIMIT_CACHE


# ----------------------------------------------------------------------------- tile pickers
def _pick_m_tile(m, cap=512):
    """Largest divisor of m that is a multiple of 8 and <= cap, else full m (always legal)."""
    if m <= cap:
        return m
    for c in range(cap, 7, -1):
        if m % c == 0 and c % 8 == 0:
            return c
    return m


def _pick_seq_tile(n, cap):
    if n <= cap:
        return n
    for c in range(cap, 7, -1):
        if n % c == 0 and c % 8 == 0:
            return c
    return n


# ----------------------------------------------------------------------------- fused linear
def pallas_matmul(x, w, b=None, *, act=None, in_ln=None, residual=None, out_ln=None,
                  eps=1e-5, out_dtype=None):
    """y = epilogue( LN_in(x) @ w )  with optional bias, GELU, residual add, LN_out.

    x: (M, K), w: (K, N).  The whole weight is one resident block (constant block index
    -> fetched from HBM exactly once).  bf16 MXU operands, f32 accumulation.
    """
    M, K = x.shape
    Kw, N = w.shape
    assert K == Kw
    out_dtype = out_dtype if out_dtype is not None else x.dtype
    tm = _pick_m_tile(M)
    grid = (M // tm,)

    # TODO(synk): add a K-tiled fallback for weights that do not fit VMEM (not needed for CvT dims).
    assert K * N * jnp.dtype(w.dtype).itemsize <= 32 * 1024 * 1024, \
        "weight too large for resident-block matmul"

    has_bias = b is not None
    has_res = residual is not None
    has_in_ln = in_ln is not None
    has_out_ln = out_ln is not None

    inputs = [x, w]
    in_specs = [
        pl.BlockSpec((tm, K), lambda i: (i, 0)),
        pl.BlockSpec((K, N), lambda i: (0, 0)),       # resident: DMA'd once
    ]
    if has_bias:
        inputs.append(b.reshape(1, N).astype(jnp.float32))
        in_specs.append(pl.BlockSpec((1, N), lambda i: (0, 0)))
    if has_in_ln:
        g1, be1 = in_ln
        inputs += [g1.reshape(1, K).astype(jnp.float32), be1.reshape(1, K).astype(jnp.float32)]
        in_specs += [pl.BlockSpec((1, K), lambda i: (0, 0)),
                     pl.BlockSpec((1, K), lambda i: (0, 0))]
    if has_res:
        inputs.append(residual)
        in_specs.append(pl.BlockSpec((tm, N), lambda i: (i, 0)))
    if has_out_ln:
        g2, be2 = out_ln
        inputs += [g2.reshape(1, N).astype(jnp.float32), be2.reshape(1, N).astype(jnp.float32)]
        in_specs += [pl.BlockSpec((1, N), lambda i: (0, 0)),
                     pl.BlockSpec((1, N), lambda i: (0, 0))]

    def kernel(*refs):
        idx = 2
        x_ref, w_ref = refs[0], refs[1]
        if has_bias:
            b_ref = refs[idx]; idx += 1
        if has_in_ln:
            g1_ref, be1_ref = refs[idx], refs[idx + 1]; idx += 2
        if has_res:
            r_ref = refs[idx]; idx += 1
        if has_out_ln:
            g2_ref, be2_ref = refs[idx], refs[idx + 1]; idx += 2
        o_ref = refs[idx]

        xv = x_ref[...]
        if has_in_ln:
            xf = xv.astype(jnp.float32)
            mu = jnp.mean(xf, axis=-1, keepdims=True)
            var = jnp.mean((xf - mu) * (xf - mu), axis=-1, keepdims=True)
            xv = (xf - mu) * jax.lax.rsqrt(var + eps) * g1_ref[...] + be1_ref[...]
        # bf16 operands into the MXU, f32 accumulation.
        acc = jnp.dot(xv.astype(jnp.bfloat16), w_ref[...].astype(jnp.bfloat16),
                      preferred_element_type=jnp.float32)
        if has_bias:
            acc = acc + b_ref[...]
        if act == "gelu":
            # TODO(synk): PyTorch nn.GELU default is exact erf; tanh approximation used here.
            c = 0.7978845608028654  # sqrt(2/pi)
            acc = 0.5 * acc * (1.0 + jnp.tanh(c * (acc + 0.044715 * acc * acc * acc)))
        if has_res:
            acc = acc + r_ref[...].astype(jnp.float32)
        if has_out_ln:
            mu2 = jnp.mean(acc, axis=-1, keepdims=True)
            var2 = jnp.mean((acc - mu2) * (acc - mu2), axis=-1, keepdims=True)
            acc = (acc - mu2) * jax.lax.rsqrt(var2 + eps) * g2_ref[...] + be2_ref[...]
        o_ref[...] = acc.astype(o_ref.dtype)

    isx = jnp.dtype(x.dtype).itemsize
    isw = jnp.dtype(w.dtype).itemsize
    iso = jnp.dtype(out_dtype).itemsize
    flops = 2 * M * K * N
    trans = (M * N if act == "gelu" else 0) + (M if (has_in_ln or has_out_ln) else 0)
    bytes_acc = M * K * isx + K * N * isw + M * N * iso
    if has_res:
        bytes_acc += M * N * jnp.dtype(residual.dtype).itemsize

    return pl.pallas_call(
        kernel,
        out_shape=jax.ShapeDtypeStruct((M, N), out_dtype),
        grid=grid,
        in_specs=in_specs,
        out_specs=pl.BlockSpec((tm, N), lambda i: (i, 0)),
        compiler_params=pltpu.CompilerParams(
            dimension_semantics=("parallel",),
            vmem_limit_bytes=_vmem_limit()),
        cost_estimate=pl.CostEstimate(flops=int(flops), transcendentals=int(trans),
                                      bytes_accessed=int(bytes_acc)),
    )(*inputs)


# ----------------------------------------------------------------------------- standalone LN (only used when depth == 0)
def pallas_layernorm(x, gamma, beta, eps=1e-5, out_dtype=None):
    M, D = x.shape
    out_dtype = out_dtype if out_dtype is not None else x.dtype
    tm = _pick_m_tile(M)

    def kernel(x_ref, g_ref, b_ref, o_ref):
        xv = x_ref[...].astype(jnp.float32)
        mu = jnp.mean(xv, axis=-1, keepdims=True)
        var = jnp.mean((xv - mu) * (xv - mu), axis=-1, keepdims=True)
        y = (xv - mu) * jax.lax.rsqrt(var + eps)
        o_ref[...] = (y * g_ref[...] + b_ref[...]).astype(o_ref.dtype)

    return pl.pallas_call(
        kernel,
        out_shape=jax.ShapeDtypeStruct((M, D), out_dtype),
        grid=(M // tm,),
        in_specs=[pl.BlockSpec((tm, D), lambda i: (i, 0)),
                  pl.BlockSpec((1, D), lambda i: (0, 0)),
                  pl.BlockSpec((1, D), lambda i: (0, 0))],
        out_specs=pl.BlockSpec((tm, D), lambda i: (i, 0)),
        compiler_params=pltpu.CompilerParams(dimension_semantics=("parallel",),
                                             vmem_limit_bytes=_vmem_limit()),
    )(x, gamma.reshape(1, D).astype(jnp.float32), beta.reshape(1, D).astype(jnp.float32))


# ----------------------------------------------------------------------------- fused LN1 + depthwise conv + linear q/k/v
def pallas_dwconv_qkv(x_img, ln_g, ln_b, dw, w_qkv, b_qkv, nh, eps=1e-5):
    """x_img: (B, H, W, D) tokens as image (pre-LN, bf16).

    dw    : (3, 9, D)  depthwise 3x3 taps with the folded-BN scale already multiplied in.
    w_qkv : (3, D, D)  linear projections (bf16); attention scale folded into branch 0.
    b_qkv : (3, D)     biases with the folded-BN shift (t @ W) already added.
    Returns q, k, v each head-major (B, nh, N, dh).
    """
    B, H, W, D = x_img.shape
    N = H * W
    dh = D // nh
    Hp, Wp = H + 2, W + 2
    out_dtype = x_img.dtype
    # TODO(synk): for v7x megacore balance / very large H*W*D, tile over spatial row
    # blocks with a 1-row halo (grid=(B, H//th)) instead of one step per batch.

    def kernel(x_ref, g_ref, be_ref, dw_ref, wp_ref, bp_ref,
               oq_ref, ok_ref, ov_ref, pad_ref):
        f32 = jnp.float32
        # LayerNorm (ln1) over channels, computed in f32.
        xv = x_ref[0].astype(f32)                                   # (H, W, D)
        mu = jnp.mean(xv, axis=-1, keepdims=True)
        var = jnp.mean((xv - mu) * (xv - mu), axis=-1, keepdims=True)
        y = (xv - mu) * jax.lax.rsqrt(var + eps) * g_ref[...] + be_ref[...]

        # Zero only the 1-wide border of the pad scratch, then write the interior
        # (no full-buffer memset per step).
        zr = jnp.zeros((1, Wp, D), f32)
        zc = jnp.zeros((H, 1, D), f32)
        pad_ref[0:1, :, :] = zr
        pad_ref[Hp - 1:Hp, :, :] = zr
        pad_ref[1:1 + H, 0:1, :] = zc
        pad_ref[1:1 + H, Wp - 1:Wp, :] = zc
        pad_ref[1:1 + H, 1:1 + W, :] = y

        outs = (oq_ref, ok_ref, ov_ref)
        for p_i in range(3):                                        # q, k, v sequentially
            acc = None
            for t in range(9):
                kh, kw = divmod(t, 3)
                xs = pad_ref[kh:kh + H, kw:kw + W, :]               # shifted tap (VMEM read)
                term = xs * dw_ref[p_i, t]                          # BN scale pre-folded into dw
                acc = term if acc is None else acc + term
            flat = acc.reshape(N, D).astype(jnp.bfloat16)           # bf16 into the MXU
            proj = jnp.dot(flat, wp_ref[p_i], preferred_element_type=jnp.float32)
            proj = proj + bp_ref[p_i]                               # BN shift pre-folded into bias
            for h in range(nh):                                     # head-major store
                outs[p_i][0, h] = proj[:, h * dh:(h + 1) * dh].astype(out_dtype)

    isz = jnp.dtype(out_dtype).itemsize
    flops = B * (3 * 9 * 2 * H * W * D + 3 * 2 * N * D * D)
    trans = B * H * W
    bytes_acc = B * N * D * 4 * isz + 3 * D * D * jnp.dtype(w_qkv.dtype).itemsize + 3 * 9 * D * 4

    out_shape = tuple(jax.ShapeDtypeStruct((B, nh, N, dh), out_dtype) for _ in range(3))
    out_specs = tuple(pl.BlockSpec((1, nh, N, dh), lambda b: (b, 0, 0, 0)) for _ in range(3))

    return pl.pallas_call(
        kernel,
        out_shape=out_shape,
        grid=(B,),
        in_specs=[
            pl.BlockSpec((1, H, W, D), lambda b: (b, 0, 0, 0)),
            pl.BlockSpec((1, D), lambda b: (0, 0)),
            pl.BlockSpec((1, D), lambda b: (0, 0)),
            pl.BlockSpec((3, 9, D), lambda b: (0, 0, 0)),
            pl.BlockSpec((3, D, D), lambda b: (0, 0, 0)),
            pl.BlockSpec((3, D), lambda b: (0, 0)),
        ],
        out_specs=out_specs,
        scratch_shapes=[pltpu.VMEM((Hp, Wp, D), jnp.float32)],
        compiler_params=pltpu.CompilerParams(dimension_semantics=("parallel",),
                                             vmem_limit_bytes=_vmem_limit()),
        cost_estimate=pl.CostEstimate(flops=int(flops), transcendentals=int(trans),
                                      bytes_accessed=int(bytes_acc)),
    )(x_img, ln_g.reshape(1, D).astype(jnp.float32), ln_b.reshape(1, D).astype(jnp.float32),
      dw.astype(jnp.float32), w_qkv, b_qkv.astype(jnp.float32))


# ----------------------------------------------------------------------------- flash-style multi-head attention (head-batched)
def pallas_flash_attention(q, k, v):
    """q, k, v: head-major (B, nh, N, dh) bf16.  Returns (B, N, nh*dh).

    Online softmax over KV tiles; all heads handled by one batched dot_general per step
    (no per-head loop, no lane-offset slicing); 1/sqrt(dh) is pre-folded into w_q.
    """
    B, nh, N, dh = q.shape
    D = nh * dh
    tq = _pick_seq_tile(N, 128)   # small q tile keeps the (nh, tq, tk) score slab in-register
    tk = _pick_seq_tile(N, 512)
    nq, nkv = N // tq, N // tk

    def kernel(q_ref, k_ref, v_ref, o_ref, m_ref, l_ref, acc_ref):
        ki = pl.program_id(2)

        @pl.when(ki == 0)
        def _():
            m_ref[...] = jnp.full(m_ref.shape, -jnp.inf, jnp.float32)
            l_ref[...] = jnp.zeros(l_ref.shape, jnp.float32)
            acc_ref[...] = jnp.zeros(acc_ref.shape, jnp.float32)

        qh = q_ref[0]                                   # (nh, tq, dh), bf16
        kh = k_ref[0]                                   # (nh, tk, dh), bf16
        vh = v_ref[0]                                   # (nh, tk, dh), bf16

        s = jax.lax.dot_general(qh, kh, (((2,), (2,)), ((0,), (0,))),
                                preferred_element_type=jnp.float32)      # (nh, tq, tk)
        m_prev = m_ref[...]
        m_new = jnp.maximum(m_prev, jnp.max(s, axis=-1, keepdims=True))
        alpha = jnp.exp(m_prev - m_new)
        p = jnp.exp(s - m_new)
        l_ref[...] = alpha * l_ref[...] + jnp.sum(p, axis=-1, keepdims=True)
        pv = jax.lax.dot_general(p.astype(vh.dtype), vh, (((2,), (1,)), ((0,), (0,))),
                                 preferred_element_type=jnp.float32)     # (nh, tq, dh)
        acc_ref[...] = alpha * acc_ref[...] + pv
        m_ref[...] = m_new

        @pl.when(ki == nkv - 1)
        def _():
            out = acc_ref[...] * pl.reciprocal(l_ref[...], approx=True)
            o_ref[0] = jnp.concatenate([out[h] for h in range(nh)], axis=-1).astype(o_ref.dtype)

    isz = jnp.dtype(q.dtype).itemsize
    flops = 4 * B * N * N * D
    trans = B * nh * N * N
    bytes_acc = isz * B * N * D * (2 + 2 * nq)          # q + out once, K/V re-read per q tile

    return pl.pallas_call(
        kernel,
        out_shape=jax.ShapeDtypeStruct((B, N, D), q.dtype),
        grid=(B, nq, nkv),
        in_specs=[pl.BlockSpec((1, nh, tq, dh), lambda b, qi, ki: (b, 0, qi, 0)),
                  pl.BlockSpec((1, nh, tk, dh), lambda b, qi, ki: (b, 0, ki, 0)),
                  pl.BlockSpec((1, nh, tk, dh), lambda b, qi, ki: (b, 0, ki, 0))],
        out_specs=pl.BlockSpec((1, tq, D), lambda b, qi, ki: (b, qi, 0)),
        scratch_shapes=[pltpu.VMEM((nh, tq, 1), jnp.float32),
                        pltpu.VMEM((nh, tq, 1), jnp.float32),
                        pltpu.VMEM((nh, tq, dh), jnp.float32)],
        compiler_params=pltpu.CompilerParams(
            dimension_semantics=("parallel", "parallel", "arbitrary"),
            vmem_limit_bytes=_vmem_limit()),
        cost_estimate=pl.CostEstimate(flops=int(flops), transcendentals=int(trans),
                                      bytes_accessed=int(bytes_acc)),
    )(q, k, v)


# ----------------------------------------------------------------------------- patch embed (im2col + fused matmul + LN)
def patch_embed(x_nchw, p):
    """Conv2d(Cin, dim, k=3, s=2, p=1) + flatten + LayerNorm (LN fused into the matmul)."""
    B, Cin, Hin, Win = x_nchw.shape
    Ho = (Hin - 1) // 2 + 1
    Wo = (Win - 1) // 2 + 1
    # TODO(synk): move the im2col into a Pallas kernel (pad once + 9 shifted dots) to avoid
    # materializing the 9x-sized HBM tensor; XLA-side for now, fed to the matmul in bf16.
    xp = jnp.pad(x_nchw, ((0, 0), (0, 0), (1, 1), (1, 1)))
    cols = jnp.stack(
        [xp[:, :, kh:kh + 2 * Ho:2, kw:kw + 2 * Wo:2] for kh in range(3) for kw in range(3)],
        axis=2,
    )                                                   # (B, Cin, 9, Ho, Wo)
    cols = cols.transpose(0, 3, 4, 1, 2).reshape(B * Ho * Wo, Cin * 9)

    K = Cin * 9
    Kp = p["pe_w"].shape[0]                             # lane-aligned (multiple of 128) by prepare_params
    if Kp != K:
        cols = jnp.pad(cols, ((0, 0), (0, Kp - K)))
    cols = cols.astype(jnp.bfloat16)

    tok = pallas_matmul(cols, p["pe_w"], p["pe_b"], out_ln=(p["pe_ln_g"], p["pe_ln_b"]))
    return tok, (Ho, Wo)


# ----------------------------------------------------------------------------- CvT block
def cvt_block(tok2d, blk, B, H, W, nh, final_norm=None, out_dtype=None):
    M, D = tok2d.shape

    himg = tok2d.reshape(B, H, W, D)
    # fused: LN1 + depthwise conv (BN pre-folded) + linear q/k/v projections, head-major out
    q, k, v = pallas_dwconv_qkv(himg, blk["ln1_g"], blk["ln1_b"],
                                blk["dw"], blk["w_qkv"], blk["b_qkv"], nh)

    attn = pallas_flash_attention(q, k, v).reshape(M, D)
    # output projection with fused residual add
    tok2d = pallas_matmul(attn, blk["wo"], blk["bo"], residual=tok2d)

    # MLP: LN2 fused into w1's input, GELU fused, residual (and optionally the final
    # stage norm) fused into w2's epilogue.
    h2 = pallas_matmul(tok2d, blk["w1"], blk["b1"], act="gelu",
                       in_ln=(blk["ln2_g"], blk["ln2_b"]))
    tok2d = pallas_matmul(h2, blk["w2"], blk["b2"], residual=tok2d,
                          out_ln=final_norm, out_dtype=out_dtype)
    return tok2d


# ----------------------------------------------------------------------------- stage forward (== CvTStage.forward)
def cvt_stage_forward(x_nchw, params, nh=2):
    tok, (H, W) = patch_embed(x_nchw, params)            # x, (H, W) = self.patch_embed(x)
    B = x_nchw.shape[0]
    blocks = params["blocks"]
    nb = len(blocks)
    has_norm = params.get("norm_g") is not None
    for i, blk in enumerate(blocks):                     # for block in self.blocks: x = block(x, H, W)
        is_last = (i == nb - 1)
        fn = (params["norm_g"], params["norm_b"]) if (has_norm and is_last) else None
        od = jnp.float32 if is_last else None
        tok = cvt_block(tok, blk, B, H, W, nh, final_norm=fn, out_dtype=od)
    if nb == 0:                                          # self.norm(x) fallback when there are no blocks
        if has_norm:
            tok = pallas_layernorm(tok, params["norm_g"], params["norm_b"],
                                   out_dtype=jnp.float32)
        else:
            tok = tok.astype(jnp.float32)
    D = tok.shape[-1]
    return tok.reshape(B, H * W, D), (H, W)              # return (x, (H, W))


# ----------------------------------------------------------------------------- parameter init + inference prep
def init_params(key, in_chans, dim, depth, mlp_ratio=4):
    keys = iter(jax.random.split(key, 256))
    nk_ = lambda: next(keys)
    f32 = jnp.float32
    eps = 1e-5

    def lin(i, o):
        return 0.02 * jax.random.normal(nk_(), (i, o), f32)

    p = {
        "pe_w": 0.02 * jax.random.normal(nk_(), (in_chans * 9, dim), f32),
        "pe_b": jnp.zeros((dim,), f32),
        "pe_ln_g": jnp.ones((dim,), f32),
        "pe_ln_b": jnp.zeros((dim,), f32),
        "norm_g": jnp.ones((dim,), f32),
        "norm_b": jnp.zeros((dim,), f32),
        "blocks": [],
    }
    hidden = dim * mlp_ratio
    for _ in range(depth):
        blk = {"ln1_g": jnp.ones((dim,), f32), "ln1_b": jnp.zeros((dim,), f32),
               "ln2_g": jnp.ones((dim,), f32), "ln2_b": jnp.zeros((dim,), f32)}
        dws, bss, bts, ws, bs = [], [], [], [], []
        for _ in range(3):                               # q, k, v projections
            # TODO(synk): PyTorch depthwise weight layout is (C,1,3,3); permute to (3,3,C)->(9,C)
            # when loading real checkpoints.
            dws.append((0.1 * jax.random.normal(nk_(), (3, 3, dim), f32)).reshape(9, dim))
            gamma = 1.0 + 0.01 * jax.random.normal(nk_(), (dim,), f32)
            beta = 0.01 * jax.random.normal(nk_(), (dim,), f32)
            run_mean = jnp.zeros((dim,), f32)
            run_var = jnp.ones((dim,), f32)
            scale = gamma / jnp.sqrt(run_var + eps)      # BN (eval mode) folded to scale/shift
            bss.append(scale)
            bts.append(beta - run_mean * scale)
            ws.append(lin(dim, dim))
            bs.append(jnp.zeros((dim,), f32))
        blk["dw"] = jnp.stack(dws)                       # (3, 9, dim)
        blk["bn_s"] = jnp.stack(bss)                     # (3, dim)
        blk["bn_t"] = jnp.stack(bts)                     # (3, dim)
        blk["w_qkv"] = jnp.stack(ws)                     # (3, dim, dim)
        blk["b_qkv"] = jnp.stack(bs)                     # (3, dim)
        blk["wo"], blk["bo"] = lin(dim, dim), jnp.zeros((dim,), f32)
        blk["w1"], blk["b1"] = lin(dim, hidden), jnp.zeros((hidden,), f32)
        blk["w2"], blk["b2"] = lin(hidden, dim), jnp.zeros((dim,), f32)
        p["blocks"].append(blk)
    return p


def prepare_params(p, nh):
    """Inference-time prep: fold BN into dw/bias, fold attention scale into w_q/b_q,
    pad the patch-embed contraction dim to a multiple of 128, cast weights to bf16."""
    q = dict(p)
    dim = p["pe_w"].shape[1]
    dh = dim // nh
    scale = 1.0 / math.sqrt(dh)

    K = p["pe_w"].shape[0]
    Kp = ((K + 127) // 128) * 128
    pe_w = p["pe_w"]
    if Kp != K:
        pe_w = jnp.pad(pe_w, ((0, Kp - K), (0, 0)))
    q["pe_w"] = pe_w.astype(jnp.bfloat16)

    q["blocks"] = []
    for blk in p["blocks"]:
        b = dict(blk)
        bn_s, bn_t = blk["bn_s"], blk["bn_t"]                         # (3, dim)
        dw = blk["dw"] * bn_s[:, None, :]                             # fold BN scale into taps
        w_qkv = blk["w_qkv"]
        b_qkv = blk["b_qkv"] + jnp.einsum("pd,pde->pe", bn_t, w_qkv)  # fold BN shift into bias
        w_qkv = w_qkv.at[0].multiply(scale)                           # fold 1/sqrt(dh) into q proj
        b_qkv = b_qkv.at[0].multiply(scale)
        b["dw"] = dw
        b["w_qkv"] = w_qkv.astype(jnp.bfloat16)
        b["b_qkv"] = b_qkv
        b["wo"] = blk["wo"].astype(jnp.bfloat16)
        b["w1"] = blk["w1"].astype(jnp.bfloat16)
        b["w2"] = blk["w2"].astype(jnp.bfloat16)
        b.pop("bn_s", None)
        b.pop("bn_t", None)
        q["blocks"].append(b)
    return q


# ----------------------------------------------------------------------------- main
if __name__ == "__main__":
    B, Cin, Hin, Win = 2, 4, 16, 16
    dim, depth, heads = 32, 2, 2

    x = jax.random.normal(jax.random.PRNGKey(0), (B, Cin, Hin, Win), jnp.float32)
    raw_params = init_params(jax.random.PRNGKey(1), in_chans=Cin, dim=dim, depth=depth)
    params = prepare_params(raw_params, nh=heads)

    out, (H, W) = cvt_stage_forward(x, params, nh=heads)
    jax.block_until_ready(out)

    assert out.shape == (B, (Hin // 2) * (Win // 2), dim)
    assert (H, W) == (Hin // 2, Win // 2)
    assert bool(jnp.all(jnp.isfinite(out)))
    print("KERNEL_OK")
</pallas_src>

<mosaic_0001>
module attributes {stable_mosaic.version = 11 : i64} {
  func.func @kernel(%arg0: i32, %arg1: memref<128x128xbf16, #tpu.memory_space<vmem>>, %arg2: memref<128x32xbf16, #tpu.memory_space<vmem>>, %arg3: memref<1x32xf32, #tpu.memory_space<vmem>>, %arg4: memref<1x32xf32, #tpu.memory_space<vmem>>, %arg5: memref<1x32xf32, #tpu.memory_space<vmem>>, %arg6: memref<128x32xbf16, #tpu.memory_space<vmem>>) attributes {dimension_semantics = [#tpu.dimension_semantics<parallel>], iteration_bounds = array<i64: 1>, scalar_prefetch = 0 : i64, scratch_operands = 0 : i64, tpu.core_type = #tpu.core_type<tc>, window_params = [{transform_indices = @transform_0, window_bounds = array<i64: 128, 128>}, {pipeline_mode = #tpu.pipeline_mode<synchronous>, transform_indices = @transform_1, window_bounds = array<i64: 128, 32>}, {pipeline_mode = #tpu.pipeline_mode<synchronous>, transform_indices = @transform_2, window_bounds = array<i64: 1, 32>}, {pipeline_mode = #tpu.pipeline_mode<synchronous>, transform_indices = @transform_3, window_bounds = array<i64: 1, 32>}, {pipeline_mode = #tpu.pipeline_mode<synchronous>, transform_indices = @transform_4, window_bounds = array<i64: 1, 32>}, {transform_indices = @transform_5, window_bounds = array<i64: 128, 32>}]} {
    %c0 = arith.constant 0 : index
    %c0_0 = arith.constant 0 : index
    %0 = vector.load %arg1[%c0, %c0_0] : memref<128x128xbf16, #tpu.memory_space<vmem>>, vector<128x128xbf16>
    %c0_1 = arith.constant 0 : index
    %c0_2 = arith.constant 0 : index
    %1 = vector.load %arg2[%c0_1, %c0_2] : memref<128x32xbf16, #tpu.memory_space<vmem>>, vector<128x32xbf16>
    %cst = arith.constant dense<0.000000e+00> : vector<128x32xf32>
    %2 = tpu.matmul %0, %1, %cst {dimension_numbers = #tpu.dot_dimension_numbers<[1], [0], [0], [1], [0, 0, 1, 1], [], []>} : vector<128x128xbf16>, vector<128x32xbf16>, vector<128x32xf32> -> vector<128x32xf32>
    %c0_3 = arith.constant 0 : index
    %c0_4 = arith.constant 0 : index
    %3 = vector.load %arg3[%c0_3, %c0_4] : memref<1x32xf32, #tpu.memory_space<vmem>>, vector<1x32xf32>
    %4 = vector.broadcast %3 : vector<1x32xf32> to vector<128x32xf32>
    %5 = arith.addf %2, %4 : vector<128x32xf32>
    %cst_5 = arith.constant dense<0.000000e+00> : vector<128xf32>
    %6 = vector.multi_reduction <add>, %5, %cst_5 [1] : vector<128x32xf32> to vector<128xf32>
    %7 = vector.shape_cast %6 : vector<128xf32> to vector<128x1xf32>
    %cst_6 = arith.constant 3.200000e+01 : f32
    %8 = vector.broadcast %cst_6 : f32 to vector<128x1xf32>
    %9 = arith.divf %7, %8 : vector<128x1xf32>
    %10 = vector.broadcast %9 : vector<128x1xf32> to vector<128x32xf32>
    %11 = arith.subf %5, %10 : vector<128x32xf32>
    %12 = vector.broadcast %9 : vector<128x1xf32> to vector<128x32xf32>
    %13 = arith.subf %5, %12 : vector<128x32xf32>
    %14 = arith.mulf %11, %13 : vector<128x32xf32>
    %cst_7 = arith.constant dense<0.000000e+00> : vector<128xf32>
    %15 = vector.multi_reduction <add>, %14, %cst_7 [1] : vector<128x32xf32> to vector<128xf32>
    %16 = vector.shape_cast %15 : vector<128xf32> to vector<128x1xf32>
    %cst_8 = arith.constant 3.200000e+01 : f32
    %17 = vector.broadcast %cst_8 : f32 to vector<128x1xf32>
    %18 = arith.divf %16, %17 : vector<128x1xf32>
    %19 = vector.broadcast %9 : vector<128x1xf32> to vector<128x32xf32>
    %20 = arith.subf %5, %19 : vector<128x32xf32>
    %cst_9 = arith.constant 9.99999974E-6 : f32
    %21 = vector.broadcast %cst_9 : f32 to vector<128x1xf32>
    %22 = arith.addf %18, %21 : vector<128x1xf32>
    %23 = math.rsqrt %22 : vector<128x1xf32>
    %24 = vector.broadcast %23 : vector<128x1xf32> to vector<128x32xf32>
    %25 = arith.mulf %20, %24 : vector<128x32xf32>
    %c0_10 = arith.constant 0 : index
    %c0_11 = arith.constant 0 : index
    %26 = vector.load %arg4[%c0_10, %c0_11] : memref<1x32xf32, #tpu.memory_space<vmem>>, vector<1x32xf32>
    %27 = vector.broadcast %26 : vector<1x32xf32> to vector<128x32xf32>
    %28 = arith.mulf %25, %27 : vector<128x32xf32>
    %c0_12 = arith.constant 0 : index
    %c0_13 = arith.constant 0 : index
    %29 = vector.load %arg5[%c0_12, %c0_13] : memref<1x32xf32, #tpu.memory_space<vmem>>, vector<1x32xf32>
    %30 = vector.broadcast %29 : vector<1x32xf32> to vector<128x32xf32>
    %31 = arith.addf %28, %30 : vector<128x32xf32>
    %32 = arith.truncf %31 : vector<128x32xf32> to vector<128x32xbf16>
    %c0_14 = arith.constant 0 : index
    %c0_15 = arith.constant 0 : index
    %33 = vector.load %arg6[%c0_14, %c0_15] : memref<128x32xbf16, #tpu.memory_space<vmem>>, vector<128x32xbf16>
    tpu.vector_store %arg6[%c0_14, %c0_15], %32 {strides = array<i32>} : memref<128x32xbf16, #tpu.memory_space<vmem>>, vector<128x32xbf16>,
    return
  }
  func.func @transform_0(%arg0: i32) -> (i32, i32) {
    %c0_i32 = arith.constant 0 : i32
    %c0_i32_0 = arith.constant 0 : i32
    return %arg0, %c0_i32 : i32, i32
  }
  func.func @transform_1(%arg0: i32) -> (i32, i32) {
    %c0_i32 = arith.constant 0 : i32
    %c0_i32_0 = arith.constant 0 : i32
    %c0_i32_1 = arith.constant 0 : i32
    return %c0_i32, %c0_i32_0 : i32, i32
  }
  func.func @transform_2(%arg0: i32) -> (i32, i32) {
    %c0_i32 = arith.constant 0 : i32
    %c0_i32_0 = arith.constant 0 : i32
    %c0_i32_1 = arith.constant 0 : i32
    return %c0_i32, %c0_i32_0 : i32, i32
  }
  func.func @transform_3(%arg0: i32) -> (i32, i32) {
    %c0_i32 = arith.constant 0 : i32
    %c0_i32_0 = arith.constant 0 : i32
    %c0_i32_1 = arith.constant 0 : i32
    return %c0_i32, %c0_i32_0 : i32, i32
  }
  func.func @transform_4(%arg0: i32) -> (i32, i32) {
    %c0_i32 = arith.constant 0 : i32
    %c0_i32_0 = arith.constant 0 : i32
    %c0_i32_1 = arith.constant 0 : i32
    return %c0_i32, %c0_i32_0 : i32, i32
  }
  func.func @transform_5(%arg0: i32) -> (i32, i32) {
    %c0_i32 = arith.constant 0 : i32
    %c0_i32_0 = arith.constant 0 : i32
    return %arg0, %c0_i32 : i32, i32
  }
}

</mosaic_0001>

<bundles_post_ra>
// kernel: tpu_custom_call.1
= control target key start
LH: loop header
LB: loop body
LE: loop exit
PB: predicated region body
PF: predicated region fallthrough
CT: control target
= control target key end

     0   :  { %vm253_vm0 = vcmask 261120   ;;  %vm573_vm1 = vcmask 257024   ;;  %s1120_s1 = inlined_call_operand.vmem [shape: bf16[128,32], index: 1, kind: input, shape index: {}]   ;;  %s1121_s0 = inlined_call_operand.vmem [shape: bf16[128,128], index: 0, kind: input, shape index: {}]   ;;  %s1122_s2 = inlined_call_operand.vmem [shape: f32[1,32], index: 2, kind: input, shape index: {}]   ;;  %s1123_s3 = inlined_call_operand.vmem [shape: f32[1,32], index: 3, kind: input, shape index: {}]   ;;  %s1124_s4 = inlined_call_operand.vmem [shape: f32[1,32], index: 4, kind: input, shape index: {}]   ;;  %s1125_s5 = inlined_call_operand.vmem [shape: bf16[128,32], index: 5, kind: output, shape index: {}]  }
   0x1   :  { %v709_v0 = vld [vmem:[%s1120_s1] sm:$0xff]   ;;  %v710_v1 = vld [vmem:[%s1120_s1 + $0x8] sm:$0xff]   ;;  %v711_v2 = vld [vmem:[%s1120_s1 + $0x10] sm:$0xff]  }
   0x2   :  { %661 = vmatprep.subr.bf16.mxu0 %v709_v0  ;;  %693 = vmatprep.subr.bf16.mxu1 %v709_v0  ;;  %v712_v3 = vld [vmem:[%s1120_s1 + $0x18] sm:$0xff]   ;;  %v717_v4 = vld [vmem:[%s1121_s0] sm:$0xff]   ;;  %v714_v7 = vld [vmem:[%s1120_s1 + $0x28] sm:$0xff]  }
   0x3   :  { %662 = vmatpush3.bf16.msra.mxu0 %v709_v0  ;;  %701 = vmatpush3.bf16.msra.mxu1 %v709_v0  ;;  %v718_v5 = vld [vmem:[%s1121_s0 + $0x20] sm:$0xff]   ;;  %v715_v8 = vld [vmem:[%s1120_s1 + $0x30] sm:$0xff]   ;;  %v716_v9 = vld [vmem:[%s1120_s1 + $0x38] sm:$0xff]  }
   0x4   :  { %663 = vmatprep.subr.bf16.mxu0 %v710_v1  ;;  %694 = vmatprep.subr.bf16.mxu1 %v710_v1  ;;  %v713_v6 = vld [vmem:[%s1120_s1 + $0x20] sm:$0xff]   ;;  %v719_v10 = vld [vmem:[%s1121_s0 + $0x8] sm:$0xff]   ;;  %v721_v12 = vld [vmem:[%s1121_s0 + $0x10] sm:$0xff]  }
   0x5   :  { %677 = vmatprep.mubr.bf16.mxu0 %v717_v4  ;;  %685 = vmatprep.mubr.bf16.mxu1 %v718_v5  ;;  %v720_v11 = vld [vmem:[%s1121_s0 + $0x28] sm:$0xff]   ;;  %v723_v13 = vld [vmem:[%s1121_s0 + $0x30] sm:$0xff]   ;;  %v722_v14 = vld [vmem:[%s1121_s0 + $0x18] sm:$0xff]  }
   0x6   :  { %v724_v15 = vld [vmem:[%s1121_s0 + $0x38] sm:$0xff]   ;;  %v594_v16 = vld [vmem:[%s1122_s2] ss:$0 sm:$0xff] }
   0x7   :  { %664 = vmatpush3.bf16.msra.mxu0 %v710_v1  ;;  %702 = vmatpush3.bf16.msra.mxu1 %v710_v1 }
   0x8   :  { %665 = vmatprep.subr.bf16.mxu0 %v711_v2  ;;  %695 = vmatprep.subr.bf16.mxu1 %v711_v2 }
   0xb   :  { %666 = vmatpush3.bf16.msra.mxu0 %v711_v2  ;;  %703 = vmatpush3.bf16.msra.mxu1 %v711_v2 }
   0xc   :  { %667 = vmatprep.subr.bf16.mxu0 %v712_v3  ;;  %696 = vmatprep.subr.bf16.mxu1 %v712_v3 }
   0xf   :  { %668 = vmatpush3.bf16.msra.mxu0 %v712_v3  ;;  %704 = vmatpush3.bf16.msra.mxu1 %v712_v3 }
  0x10   :  { %669 = vmatprep.subr.bf16.mxu0 %v713_v6  ;;  %697 = vmatprep.subr.bf16.mxu1 %v713_v6 }
  0x13   :  { %670 = vmatpush3.bf16.msra.mxu0 %v713_v6  ;;  %705 = vmatpush3.bf16.msra.mxu1 %v713_v6 }
  0x14   :  { %671 = vmatprep.subr.bf16.mxu0 %v714_v7  ;;  %698 = vmatprep.subr.bf16.mxu1 %v714_v7 }
  0x17   :  { %672 = vmatpush3.bf16.msra.mxu0 %v714_v7  ;;  %706 = vmatpush3.bf16.msra.mxu1 %v714_v7 }
  0x18   :  { %673 = vmatprep.subr.bf16.mxu0 %v715_v8  ;;  %699 = vmatprep.subr.bf16.mxu1 %v715_v8 }
  0x1b   :  { %674 = vmatpush3.bf16.msra.mxu0 %v715_v8  ;;  %707 = vmatpush3.bf16.msra.mxu1 %v715_v8 }
  0x1c   :  { %675 = vmatprep.subr.bf16.mxu0 %v716_v9  ;;  %700 = vmatprep.subr.bf16.mxu1 %v716_v9 }
  0x1f   :  { %676 = vmatpush3.bf16.msra.mxu0 %v716_v9  ;;  %708 = vmatpush3.bf16.msra.mxu1 %v716_v9 }
  0x22   :  { %678 = vmatmul.mubr.bf16.vlgmr.msra.gmra.mrb[0].mxu0 %v719_v10  ;;  %686 = vmatmul.mubr.bf16.vlgmr.msra.gmra.mrb[0].mxu1 %v720_v11 }
  0x23   :  { %681 = vmatprep.mubr.bf16.mxu0 %v721_v12  ;;  %689 = vmatprep.mubr.bf16.mxu1 %v723_v13 }
  0x2a   :  { %682 = vmatmul.mubr.bf16.gmra.mrb[4].mxu0 %v722_v14  ;;  %690 = vmatmul.mubr.bf16.gmra.mrb[4].mxu1 %v724_v15 }
  0xf5   :  { %v679_v17 = vpop.f32.mrb[0].mxu0  ;;  %v687_v18 = vpop.f32.mrb[0].mxu1 }
  0xf6   :  { %v838_v19 = vadd.f32 %v679_v17, %v594_v16  ;;  %v840_v20 = vadd.f32 %v687_v18, %v594_v16  ;;  %v190_v21 = vpop.f32.mrb[1].mxu0  ;;  %v222_v22 = vpop.f32.mrb[1].mxu1 }
  0xf7   :  { %v680_v23 = vpop.f32.mrb[2].mxu0  ;;  %v688_v24 = vpop.f32.mrb[2].mxu1  ;;  %v842_v25 = vadd.f32 %v594_v16, %v190_v21  ;;  %v850_v31 = vadd.f32 %v594_v16, %v222_v22 }
  0xf8   :  { %v844_v26 = vadd.f32 %v680_v23, %v594_v16  ;;  %v193_v27 = vpop.f32.mrb[3].mxu0  ;;  %v225_v28 = vpop.f32.mrb[3].mxu1  ;;  %v284_v29 = vsel %vm253_vm0, %v840_v20, 0.0  ;;  %v260_v30 = vsel %vm253_vm0, %v838_v19, 0.0  ;;  %v852_v32 = vadd.f32 %v688_v24, %v594_v16 }
  0xf9   :  { %285 = vadd.xlane.f32.xlu0 %v284_v29  ;;  %261 = vadd.xlane.f32.xlu1 %v260_v30  ;;  %v254_v34 = vsel %vm253_vm0, %v842_v25, 0.0  ;;  %v858_v41 = vadd.f32 %v594_v16, %v193_v27  ;;  %v860_v42 = vadd.f32 %v594_v16, %v225_v28  ;;  %v278_v44 = vsel %vm253_vm0, %v850_v31, 0.0 }
  0xfa   :  { %v263_v33 = vsel %vm253_vm0, %v844_v26, 0.0  ;;  %v287_v43 = vsel %vm253_vm0, %v852_v32, 0.0 }
  0xfb   :  { %v281_v49 = vsel %vm253_vm0, %v860_v42, 0.0  ;;  %v257_v50 = vsel %vm253_vm0, %v858_v41, 0.0 }
  0xfd   :  { %264 = vadd.xlane.f32.xlu1 %v263_v33  ;;  %255 = vadd.xlane.f32.xlu0 %v254_v34  ;;  %v683_v35 = vpop.f32.mrb[4].mxu0  ;;  %v691_v36 = vpop.f32.mrb[4].mxu1 }
  0xfe   :  { %v206_v37 = vpop.f32.mrb[5].mxu0  ;;  %v238_v38 = vpop.f32.mrb[5].mxu1  ;;  %v866_v47 = vadd.f32 %v683_v35, %v594_v16  ;;  %v894_v61 = vadd.f32 %v691_v36, %v594_v16 }
  0xff   :  { %v684_v39 = vpop.f32.mrb[6].mxu0  ;;  %v692_v40 = vpop.f32.mrb[6].mxu1  ;;  %v878_v53 = vadd.f32 %v594_v16, %v206_v37  ;;  %v882_v55 = vadd.f32 %v594_v16, %v238_v38 }
 0x100   :  { %v209_v45 = vpop.f32.mrb[7].mxu0  ;;  %v241_v46 = vpop.f32.mrb[7].mxu1  ;;  %v868_v48 = vadd.f32 %v684_v39, %v594_v16  ;;  %v272_v52 = vsel %vm253_vm0, %v866_v47, 0.0  ;;  %v896_v62 = vadd.f32 %v692_v40, %v594_v16  ;;  %v296_v0 = vsel %vm253_vm0, %v894_v61, 0.0 }
 0x101   :  { %288 = vadd.xlane.f32.xlu1 %v287_v43  ;;  %279 = vadd.xlane.f32.xlu0 %v278_v44  ;;  %v880_v54 = vadd.f32 %v594_v16, %v209_v45  ;;  %v884_v56 = vadd.f32 %v594_v16, %v241_v46  ;;  %v266_v58 = vsel %vm253_vm0, %v878_v53, 0.0  ;;  %v290_v60 = vsel %vm253_vm0, %v882_v55, 0.0 }
 0x102   :  { %v275_v51 = vsel %vm253_vm0, %v868_v48, 0.0  ;;  %v299_v63 = vsel %vm253_vm0, %v896_v62, 0.0 }
 0x103   :  { %v269_v57 = vsel %vm253_vm0, %v880_v54, 0.0  ;;  %v293_v59 = vsel %vm253_vm0, %v884_v56, 0.0 }
 0x105   :  { %282 = vadd.xlane.f32.xlu1 %v281_v49  ;;  %258 = vadd.xlane.f32.xlu0 %v257_v50 }
 0x109   :  { %276 = vadd.xlane.f32.xlu1 %v275_v51  ;;  %273 = vadd.xlane.f32.xlu0 %v272_v52 }
 0x10d   :  { %270 = vadd.xlane.f32.xlu1 %v269_v57  ;;  %267 = vadd.xlane.f32.xlu0 %v266_v58 }
 0x111   :  { %294 = vadd.xlane.f32.xlu1 %v293_v59  ;;  %291 = vadd.xlane.f32.xlu0 %v290_v60 }
 0x115   :  { %300 = vadd.xlane.f32.xlu1 %v299_v63  ;;  %297 = vadd.xlane.f32.xlu0 %v296_v0 }
 0x186   :  { %v286_v1 = vpop.xlane.xlu0 %285  ;;  %v262_v2 = vpop.xlane.xlu1 %261 }
 0x187   :  { %v313_v3 = vmul.f32 0.03125, %v286_v1  ;;  %v305_v4 = vmul.f32 0.03125, %v262_v2 }
 0x189   :  { %v903_v5 = vsub.f32 %v840_v20, %v313_v3  ;;  %v906_v6 = vsub.f32 %v838_v19, %v305_v4 }
 0x18a   :  { %v265_v7 = vpop.xlane.xlu1 %264  ;;  %v256_v8 = vpop.xlane.xlu0 %255 }
 0x18b   :  { %v306_v9 = vmul.f32 0.03125, %v265_v7  ;;  %v303_v10 = vmul.f32 0.03125, %v256_v8  ;;  %v337_v11 = vmul.f32 %v906_v6, %v906_v6  ;;  %v345_v15 = vmul.f32 %v903_v5, %v903_v5 }
 0x18d   :  { %v911_v12 = vsub.f32 %v844_v26, %v306_v9  ;;  %v914_v13 = vsub.f32 %v842_v25, %v303_v10  ;;  %v357_v14 = vsel %vm253_vm0, %v337_v11, 0.0  ;;  %v381_v25 = vsel %vm253_vm0, %v345_v15, 0.0 }
 0x18e   :  { %v289_v16 = vpop.xlane.xlu1 %288  ;;  %358 = vadd.xlane.f32.xlu0 %v357_v14  ;;  %v280_v17 = vpop.xlane.xlu0 %279 }
 0x18f   :  { %v314_v18 = vmul.f32 0.03125, %v289_v16  ;;  %v311_v19 = vmul.f32 0.03125, %v280_v17  ;;  %v338_v20 = vmul.f32 %v911_v12, %v911_v12  ;;  %v335_v21 = vmul.f32 %v914_v13, %v914_v13 }
 0x191   :  { %v924_v22 = vsub.f32 %v852_v32, %v314_v18  ;;  %v927_v23 = vsub.f32 %v850_v31, %v311_v19  ;;  %v360_v24 = vsel %vm253_vm0, %v338_v20, 0.0  ;;  %v351_v33 = vsel %vm253_vm0, %v335_v21, 0.0 }
 0x192   :  { %v283_v26 = vpop.xlane.xlu1 %282  ;;  %361 = vadd.xlane.f32.xlu1 %v360_v24  ;;  %382 = vadd.xlane.f32.xlu0 %v381_v25  ;;  %v259_v27 = vpop.xlane.xlu0 %258 }
 0x193   :  { %v312_v28 = vmul.f32 0.03125, %v283_v26  ;;  %v304_v29 = vmul.f32 0.03125, %v259_v27  ;;  %v346_v30 = vmul.f32 %v924_v22, %v924_v22  ;;  %v343_v35 = vmul.f32 %v927_v23, %v927_v23 }
 0x195   :  { %v935_v32 = vsub.f32 %v860_v42, %v312_v28  ;;  %v938_v31 = vsub.f32 %v858_v41, %v304_v29  ;;  %v384_v34 = vsel %vm253_vm0, %v346_v30, 0.0  ;;  %v375_v44 = vsel %vm253_vm0, %v343_v35, 0.0 }
 0x196   :  { %v277_v36 = vpop.xlane.xlu1 %276  ;;  %385 = vadd.xlane.f32.xlu1 %v384_v34  ;;  %352 = vadd.xlane.f32.xlu0 %v351_v33  ;;  %v274_v37 = vpop.xlane.xlu0 %273 }
 0x197   :  { %v310_v38 = vmul.f32 0.03125, %v277_v36  ;;  %v309_v39 = vmul.f32 0.03125, %v274_v37  ;;  %v336_v40 = vmul.f32 %v938_v31, %v938_v31  ;;  %v344_v42 = vmul.f32 %v935_v32, %v935_v32 }
 0x199   :  { %v948_v41 = vsub.f32 %v868_v48, %v310_v38  ;;  %v951_v43 = vsub.f32 %v866_v47, %v309_v39  ;;  %v354_v45 = vsel %vm253_vm0, %v336_v40, 0.0  ;;  %v378_v57 = vsel %vm253_vm0, %v344_v42, 0.0 }
 0x19a   :  { %v271_v46 = vpop.xlane.xlu1 %270  ;;  %376 = vadd.xlane.f32.xlu0 %v375_v44  ;;  %355 = vadd.xlane.f32.xlu1 %v354_v45  ;;  %v268_v49 = vpop.xlane.xlu0 %267 }
 0x19b   :  { %v308_v50 = vmul.f32 0.03125, %v271_v46  ;;  %v307_v51 = vmul.f32 0.03125, %v268_v49  ;;  %v341_v52 = vmul.f32 %v951_v43, %v951_v43  ;;  %v342_v59 = vmul.f32 %v948_v41, %v948_v41  ;;  %v1001_v49 = vld [vmem:[%s1123_s3] ss:$0 sm:$0xff] }
 0x19d   :  { %v959_v48 = vsub.f32 %v880_v54, %v308_v50  ;;  %v962_v47 = vsub.f32 %v878_v53, %v307_v51  ;;  %v369_v58 = vsel %vm253_vm0, %v341_v52, 0.0  ;;  %v372_v4 = vsel %vm253_vm0, %v342_v59, 0.0  ;;  %v1007_v59 = vld [vmem:[%s1124_s4] ss:$0 sm:$0xff] }
 0x19e   :  { %v295_v60 = vpop.xlane.xlu1 %294  ;;  %379 = vadd.xlane.f32.xlu1 %v378_v57  ;;  %370 = vadd.xlane.f32.xlu0 %v369_v58  ;;  %v292_v63 = vpop.xlane.xlu0 %291 }
 0x19f   :  { %v316_v0 = vmul.f32 0.03125, %v295_v60  ;;  %v315_v1 = vmul.f32 0.03125, %v292_v63  ;;  %v339_v2 = vmul.f32 %v962_v47, %v962_v47  ;;  %v340_v54 = vmul.f32 %v959_v48, %v959_v48 }
 0x1a1   :  { %v972_v53 = vsub.f32 %v884_v56, %v316_v0  ;;  %v975_v3 = vsub.f32 %v882_v55, %v315_v1  ;;  %v363_v7 = vsel %vm253_vm0, %v339_v2, 0.0  ;;  %v366_v15 = vsel %vm253_vm0, %v340_v54, 0.0 }
 0x1a2   :  { %v301_v8 = vpop.xlane.xlu1 %300  ;;  %373 = vadd.xlane.f32.xlu1 %v372_v4  ;;  %364 = vadd.xlane.f32.xlu0 %v363_v7  ;;  %v298_v9 = vpop.xlane.xlu0 %297 }
 0x1a3   :  { %v318_v10 = vmul.f32 0.03125, %v301_v8  ;;  %v317_v11 = vmul.f32 0.03125, %v298_v9  ;;  %v347_v14 = vmul.f32 %v975_v3, %v975_v3  ;;  %v348_v17 = vmul.f32 %v972_v53, %v972_v53 }
 0x1a5   :  { %v983_v56 = vsub.f32 %v896_v62, %v318_v10  ;;  %v986_v55 = vsub.f32 %v894_v61, %v317_v11  ;;  %v387_v16 = vsel %vm253_vm0, %v347_v14, 0.0  ;;  %v390_v19 = vsel %vm253_vm0, %v348_v17, 0.0 }
 0x1a6   :  { %367 = vadd.xlane.f32.xlu1 %v366_v15  ;;  %388 = vadd.xlane.f32.xlu0 %v387_v16 }
 0x1a7   :  { %v349_v18 = vmul.f32 %v986_v55, %v986_v55  ;;  %v350_v62 = vmul.f32 %v983_v56, %v983_v56 }
 0x1a9   :  { %v393_v20 = vsel %vm253_vm0, %v349_v18, 0.0  ;;  %v396_v61 = vsel %vm253_vm0, %v350_v62, 0.0 }
 0x1aa   :  { %391 = vadd.xlane.f32.xlu1 %v390_v19  ;;  %394 = vadd.xlane.f32.xlu0 %v393_v20 }
 0x1ae   :  { %397 = vadd.xlane.f32.xlu1 %v396_v61 }
 0x21b   :  { %v359_v21 = vpop.xlane.xlu0 %358 }
 0x21c   :  { %v401_v24 = vmul.f32 0.03125, %v359_v21 }
 0x21e   :  { %v417_v25 = vadd.f32 1e-05, %v401_v24 }
 0x21f   :  { %v362_v26 = vpop.xlane.xlu1 %361  ;;  %v383_v27 = vpop.xlane.xlu0 %382 }
 0x220   :  { %725 = vrsqrt.f32 %v417_v25  ;;  %v402_v28 = vmul.f32 0.03125, %v362_v26  ;;  %v409_v29 = vmul.f32 0.03125, %v383_v27 }
 0x222   :  { %v418_v30 = vadd.f32 1e-05, %v402_v28  ;;  %v425_v33 = vadd.f32 1e-05, %v409_v29 }
 0x223   :  { %v386_v34 = vpop.xlane.xlu1 %385  ;;  %v353_v35 = vpop.xlane.xlu0 %352 }
 0x224   :  { %727 = vrsqrt.f32 %v418_v30  ;;  %v410_v36 = vmul.f32 0.03125, %v386_v34  ;;  %v399_v37 = vmul.f32 0.03125, %v353_v35 }
 0x225   :  { %729 = vrsqrt.f32 %v425_v33 }
 0x226   :  { %v426_v38 = vadd.f32 1e-05, %v410_v36  ;;  %v415_v39 = vadd.f32 1e-05, %v399_v37 }
 0x227   :  { %v356_v40 = vpop.xlane.xlu1 %355  ;;  %v377_v42 = vpop.xlane.xlu0 %376 }
 0x228   :  { %731 = vrsqrt.f32 %v426_v38  ;;  %v400_v44 = vmul.f32 0.03125, %v356_v40  ;;  %v407_v45 = vmul.f32 0.03125, %v377_v42 }
 0x229   :  { %733 = vrsqrt.f32 %v415_v39 }
 0x22a   :  { %v726_v46 = vpop.eup %725  ;;  %v416_v50 = vadd.f32 1e-05, %v400_v44  ;;  %v423_v51 = vadd.f32 1e-05, %v407_v45 }
 0x22b   :  { %v449_v52 = vmul.f32 %v726_v46, %v906_v6  ;;  %v380_v57 = vpop.xlane.xlu1 %379  ;;  %v371_v58 = vpop.xlane.xlu0 %370 }
 0x22c   :  { %735 = vrsqrt.f32 %v416_v50  ;;  %v408_v60 = vmul.f32 0.03125, %v380_v57  ;;  %v405_v63 = vmul.f32 0.03125, %v371_v58 }
 0x22d   :  { %v472_v0 = vmul.f32 %v1001_v49, %v449_v52  ;;  %737 = vrsqrt.f32 %v423_v51 }
 0x22e   :  { %v728_v1 = vpop.eup %727  ;;  %v424_v2 = vadd.f32 1e-05, %v408_v60  ;;  %v421_v54 = vadd.f32 1e-05, %v405_v63 }
 0x22f   :  { %v730_v4 = vpop.eup %729  ;;  %v495_v6 = vadd.f32 %v1007_v59, %v472_v0  ;;  %v450_v7 = vmul.f32 %v728_v1, %v911_v12  ;;  %v374_v8 = vpop.xlane.xlu1 %373 }
 0x230   :  { %v365_v9 = vpop.xlane.xlu0 %364  ;;  %v457_v10 = vmul.f32 %v730_v4, %v903_v5  ;;  %739 = vrsqrt.f32 %v424_v2  ;;  %v406_v11 = vmul.f32 0.03125, %v374_v8 }
 0x231   :  { %v403_v14 = vmul.f32 0.03125, %v365_v9  ;;  %v631_v15 = vpack.c.bf16 %v495_v6, %v495_v6  ;;  %v473_v16 = vmul.f32 %v1001_v49, %v450_v7  ;;  %741 = vrsqrt.f32 %v421_v54 }
 0x232   :  { %v732_v17 = vpop.eup %731  ;;  %v480_v18 = vmul.f32 %v1001_v49, %v457_v10  ;;  %v422_v19 = vadd.f32 1e-05, %v406_v11 }
 0x233   :  { %v419_v20 = vadd.f32 1e-05, %v403_v14  ;;  %v734_v62 = vpop.eup %733  ;;  %576 = vst.msk [vmem:[%s1125_s5 + $0x8] sm:$0xf] %vm573_vm1, %v631_v15  ;;  %v496_v5 = vadd.f32 %v1007_v59, %v473_v16  ;;  %v458_v12 = vmul.f32 %v732_v17, %v924_v22  ;;  %v368_v61 = vpop.xlane.xlu1 %367 }
 0x234   :  { %v389_v21 = vpop.xlane.xlu0 %388  ;;  %v503_v24 = vadd.f32 %v1007_v59, %v480_v18  ;;  %v447_v25 = vmul.f32 %v734_v62, %v914_v13  ;;  %743 = vrsqrt.f32 %v422_v19  ;;  %v404_v26 = vmul.f32 0.03125, %v368_v61 }
 0x235   :  { %v632_v27 = vpack.c.bf16 %v496_v5, %v496_v5  ;;  %v481_v28 = vmul.f32 %v1001_v49, %v458_v12  ;;  %745 = vrsqrt.f32 %v419_v20  ;;  %v411_v29 = vmul.f32 0.03125, %v389_v21 }
 0x236   :  { %v736_v30 = vpop.eup %735  ;;  %v639_v33 = vpack.c.bf16 %v503_v24, %v503_v24  ;;  %v470_v34 = vmul.f32 %v1001_v49, %v447_v25  ;;  %v420_v35 = vadd.f32 1e-05, %v404_v26 }
 0x237   :  { %v738_v36 = vpop.eup %737  ;;  %577 = vst.msk [vmem:[%s1125_s5 + $0xc] sm:$0xf] %vm573_vm1, %v632_v27  ;;  %v504_v13 = vadd.f32 %v1007_v59, %v481_v28  ;;  %v448_v22 = vmul.f32 %v736_v30, %v938_v31  ;;  %v427_v37 = vadd.f32 1e-05, %v411_v29  ;;  %v392_v38 = vpop.xlane.xlu1 %391 }
 0x238   :  { %v395_v39 = vpop.xlane.xlu0 %394  ;;  %584 = vst.msk [vmem:[%s1125_s5 + $0x28] sm:$0xf] %vm573_vm1, %v639_v33  ;;  %v493_v40 = vadd.f32 %v1007_v59, %v470_v34  ;;  %v455_v42 = vmul.f32 %v738_v36, %v927_v23  ;;  %747 = vrsqrt.f32 %v420_v35  ;;  %v412_v44 = vmul.f32 0.03125, %v392_v38 }
 0x239   :  { %v640_v45 = vpack.c.bf16 %v504_v13, %v504_v13  ;;  %v471_v46 = vmul.f32 %v1001_v49, %v448_v22  ;;  %749 = vrsqrt.f32 %v427_v37  ;;  %v413_v50 = vmul.f32 0.03125, %v395_v39 }
 0x23a   :  { %v740_v31 = vpop.eup %739  ;;  %v629_v51 = vpack.c.bf16 %v493_v40, %v493_v40  ;;  %v478_v52 = vmul.f32 %v1001_v49, %v455_v42  ;;  %v428_v57 = vadd.f32 1e-05, %v412_v44 }
 0x23b   :  { %v742_v58 = vpop.eup %741  ;;  %585 = vst.msk [vmem:[%s1125_s5 + $0x2c] sm:$0xf] %vm573_vm1, %v640_v45  ;;  %v494_v23 = vadd.f32 %v1007_v59, %v471_v46  ;;  %v456_v60 = vmul.f32 %v740_v31, %v935_v32  ;;  %v429_v63 = vadd.f32 1e-05, %v413_v50  ;;  %v398_v0 = vpop.xlane.xlu1 %397 }
 0x23c   :  { %574 = vst.msk [vmem:[%s1125_s5] sm:$0xf] %vm573_vm1, %v629_v51  ;;  %v501_v1 = vadd.f32 %v1007_v59, %v478_v52  ;;  %v453_v2 = vmul.f32 %v742_v58, %v951_v43  ;;  %751 = vrsqrt.f32 %v428_v57  ;;  %v414_v54 = vmul.f32 0.03125, %v398_v0 }
 0x23d   :  { %v630_v4 = vpack.c.bf16 %v494_v23, %v494_v23  ;;  %v479_v6 = vmul.f32 %v1001_v49, %v456_v60  ;;  %753 = vrsqrt.f32 %v429_v63 }
 0x23e   :  { %v744_v7 = vpop.eup %743  ;;  %v637_v8 = vpack.c.bf16 %v501_v1, %v501_v1  ;;  %v476_v32 = vmul.f32 %v1001_v49, %v453_v2  ;;  %v430_v9 = vadd.f32 1e-05, %v414_v54 }
 0x23f   :  { %v746_v10 = vpop.eup %745  ;;  %575 = vst.msk [vmem:[%s1125_s5 + $0x4] sm:$0xf] %vm573_vm1, %v630_v4  ;;  %v502_v11 = vadd.f32 %v1007_v59, %v479_v6  ;;  %v454_v43 = vmul.f32 %v744_v7, %v948_v41 }
 0x240   :  { %582 = vst.msk [vmem:[%s1125_s5 + $0x20] sm:$0xf] %vm573_vm1, %v637_v8  ;;  %v499_v14 = vadd.f32 %v1007_v59, %v476_v32  ;;  %v451_v15 = vmul.f32 %v746_v10, %v962_v47  ;;  %755 = vrsqrt.f32 %v430_v9 }
 0x241   :  { %v638_v16 = vpack.c.bf16 %v502_v11, %v502_v11  ;;  %v477_v17 = vmul.f32 %v1001_v49, %v454_v43 }
 0x242   :  { %v748_v18 = vpop.eup %747  ;;  %v635_v19 = vpack.c.bf16 %v499_v14, %v499_v14  ;;  %v474_v20 = vmul.f32 %v1001_v49, %v451_v15 }
 0x243   :  { %v750_v62 = vpop.eup %749  ;;  %583 = vst.msk [vmem:[%s1125_s5 + $0x24] sm:$0xf] %vm573_vm1, %v638_v16  ;;  %v500_v41 = vadd.f32 %v1007_v59, %v477_v17  ;;  %v452_v5 = vmul.f32 %v748_v18, %v959_v48 }
 0x244   :  { %580 = vst.msk [vmem:[%s1125_s5 + $0x18] sm:$0xf] %vm573_vm1, %v635_v19  ;;  %v497_v47 = vadd.f32 %v1007_v59, %v474_v20  ;;  %v459_v12 = vmul.f32 %v750_v62, %v975_v3 }
 0x245   :  { %v636_v61 = vpack.c.bf16 %v500_v41, %v500_v41  ;;  %v475_v21 = vmul.f32 %v1001_v49, %v452_v5 }
 0x246   :  { %v752_v24 = vpop.eup %751  ;;  %v633_v25 = vpack.c.bf16 %v497_v47, %v497_v47  ;;  %v482_v26 = vmul.f32 %v1001_v49, %v459_v12 }
 0x247   :  { %v754_v27 = vpop.eup %753  ;;  %581 = vst.msk [vmem:[%s1125_s5 + $0x1c] sm:$0xf] %vm573_vm1, %v636_v61  ;;  %v498_v48 = vadd.f32 %v1007_v59, %v475_v21  ;;  %v460_v28 = vmul.f32 %v752_v24, %v972_v53 }
 0x248   :  { %578 = vst.msk [vmem:[%s1125_s5 + $0x10] sm:$0xf] %vm573_vm1, %v633_v25  ;;  %v505_v3 = vadd.f32 %v1007_v59, %v482_v26  ;;  %v461_v29 = vmul.f32 %v754_v27, %v986_v55 }
 0x249   :  { %v634_v30 = vpack.c.bf16 %v498_v48, %v498_v48  ;;  %v483_v33 = vmul.f32 %v1001_v49, %v460_v28 }
 0x24a   :  { %v756_v34 = vpop.eup %755  ;;  %v641_v35 = vpack.c.bf16 %v505_v3, %v505_v3  ;;  %v484_v36 = vmul.f32 %v1001_v49, %v461_v29 }
 0x24b   :  { %579 = vst.msk [vmem:[%s1125_s5 + $0x14] sm:$0xf] %vm573_vm1, %v634_v30  ;;  %v506_v53 = vadd.f32 %v1007_v59, %v483_v33  ;;  %v462_v13 = vmul.f32 %v756_v34, %v983_v56 }
 0x24c   :  { %586 = vst.msk [vmem:[%s1125_s5 + $0x30] sm:$0xf] %vm573_vm1, %v641_v35  ;;  %v507_v55 = vadd.f32 %v1007_v59, %v484_v36 }
 0x24d   :  { %v642_v22 = vpack.c.bf16 %v506_v53, %v506_v53  ;;  %v485_v37 = vmul.f32 %v1001_v49, %v462_v13 }
 0x24e   :  { %v643_v38 = vpack.c.bf16 %v507_v55, %v507_v55 }
 0x24f   :  { %587 = vst.msk [vmem:[%s1125_s5 + $0x34] sm:$0xf] %vm573_vm1, %v642_v22  ;;  %v508_v39 = vadd.f32 %v1007_v59, %v485_v37 }
 0x250   :  { %588 = vst.msk [vmem:[%s1125_s5 + $0x38] sm:$0xf] %vm573_vm1, %v643_v38 }
 0x251   :  { %v644_v56 = vpack.c.bf16 %v508_v39, %v508_v39 }
 0x253   :  { %589 = vst.msk [vmem:[%s1125_s5 + $0x3c] sm:$0xf] %vm573_vm1, %v644_v56 }

</bundles_post_ra>
